<compile_context>
chip_gen: v7x
topology: tpu7x:2x2x1
jax: 0.10.0
libtpu: 0.0.40
codegen_flags: <defaults>
</compile_context>

<pallas_src>
import functools

import jax
import jax.numpy as jnp
import numpy as np
from jax import lax
from jax.experimental import pallas as pl
from jax.experimental.pallas import tpu as pltpu


def _sigmoid(z):
    # Numerically-stable sigmoid from exp/abs/select (exp runs on the EUP slot).
    e = jnp.exp(-jnp.abs(z))
    return jnp.where(z >= 0.0, 1.0 / (1.0 + e), e / (1.0 + e))


# --------------------------------------------------------------------------
# Pass 1: adaptive pools + gates. Grid (N, C//tc); channel axis is "arbitrary"
# (the (C,D)/(C,HW) output blocks are resident across it and finalized at the
# last chunk).
# --------------------------------------------------------------------------
def _pool_gate_kernel(x_ref, w1_ref, b1_ref, wd_ref, bd_ref, wh_ref, bh_ref,
                      ww_ref, bw_ref, ph_ref, pw_ref, gd_ref, ghw_ref,
                      *, D, H, W):
    k = pl.program_id(1)
    n_chunks = pl.num_programs(1)
    tc = x_ref.shape[0]
    c0 = pl.multiple_of(k * tc, tc)

    xs = x_ref[...].astype(jnp.float32)                        # (tc, D, HW)
    # Row-scatter raw pooled sums into the resident output blocks.
    gd_ref[pl.ds(c0, tc), :] = jnp.sum(xs, axis=2)             # sum over H*W -> (tc, D)
    ghw_ref[pl.ds(c0, tc), :] = jnp.sum(xs, axis=1)            # sum over D   -> (tc, HW)

    @pl.when(k == n_chunks - 1)
    def _finalize():
        inv_hw = 1.0 / (H * W)
        inv_dw = 1.0 / (D * W)
        inv_dh = 1.0 / (D * H)

        s_hw = ghw_ref[...]                                    # (C, HW) sums over D
        p_d = gd_ref[...] * inv_hw                             # (C, D)
        # H / W pools via 0/1 selection matrices on the (idle) MXU.
        p_h = jnp.dot(s_hw, ph_ref[...],
                      preferred_element_type=jnp.float32) * inv_dw   # (C, H)
        p_w = jnp.dot(s_hw, pw_ref[...],
                      preferred_element_type=jnp.float32) * inv_dh   # (C, W)

        y = jnp.concatenate([p_d, p_h, p_w], axis=1)           # (C, D+H+W)

        # conv1 (1x1x1 == channel matmul) with BatchNorm folded in, then h-swish.
        y1 = jnp.dot(w1_ref[...], y,
                     preferred_element_type=jnp.float32) + b1_ref[...]
        y1 = y1 * jnp.clip(y1 + 3.0, 0.0, 6.0) * (1.0 / 6.0)

        a_d = _sigmoid(jnp.dot(wd_ref[...], y1[:, :D],
                               preferred_element_type=jnp.float32) + bd_ref[...])   # (C, D)
        a_h = _sigmoid(jnp.dot(wh_ref[...], y1[:, D:D + H],
                               preferred_element_type=jnp.float32) + bh_ref[...])   # (C, H)
        a_w = _sigmoid(jnp.dot(ww_ref[...], y1[:, D + H:],
                               preferred_element_type=jnp.float32) + bw_ref[...])   # (C, W)

        # Fused lane-dense spatial gate: gate[c, h*W + w] = a_h[c, h] * a_w[c, w].
        # Reuse ph/pw transposed (contract dim 1 vs dim 1) -> no eh/ew constants.
        g_h = lax.dot_general(a_h, ph_ref[...], (((1,), (1,)), ((), ())),
                              preferred_element_type=jnp.float32)     # (C, HW)
        g_w = lax.dot_general(a_w, pw_ref[...], (((1,), (1,)), ((), ())),
                              preferred_element_type=jnp.float32)     # (C, HW)

        ghw_ref[...] = g_h * g_w
        gd_ref[...] = a_d


# --------------------------------------------------------------------------
# Pass 2: out = identity * a_d * (a_h * a_w). Fully parallel, lane-dense.
# --------------------------------------------------------------------------
def _apply_kernel(x_ref, gd_ref, ghw_ref, out_ref):
    xs = x_ref[...].astype(jnp.float32)                        # (tc, D, HW)
    out_ref[...] = (xs
                    * gd_ref[...][:, :, None]                  # (tc, D, 1)
                    * ghw_ref[...][:, None, :]).astype(out_ref.dtype)


def _pick_channel_chunk(C, D, HW, itemsize, budget_bytes=2 << 20, min_chunks=4):
    """Channel chunk: divisor of C, (tc % 8 == 0 or tc == C), sized so the
    (tc, D, HW) block stays under `budget_bytes` while preferring >= min_chunks
    grid steps along C for pipelining."""
    valid = [t for t in range(1, C + 1) if C % t == 0 and (t % 8 == 0 or t == C)]
    per_c = D * HW * itemsize
    fits = [t for t in valid if t * per_c <= budget_bytes]
    deep = [t for t in fits if C // t >= min_chunks]
    if deep:
        return max(deep)
    if fits:
        return max(fits)
    return min(valid)


def _vmem_limit_bytes(block_bytes, C, D, HW):
    """Generation-aware scoped-VMEM limit (v5e/v6e: 128 MiB, v7x: 64 MiB)."""
    try:
        info = pltpu.get_tpu_info()
        cap = int(getattr(info, "vmem_capacity_bytes", 64 << 20))
    except Exception:  # not on TPU / very old runtime
        cap = 64 << 20
    aux = 4 * 4 * C * (D + HW) + (4 << 20)      # gate blocks + weights headroom
    needed = 4 * block_bytes + aux + (8 << 20)  # in+out double-buffered blocks
    return int(max(32 << 20, min(needed, (cap * 4) // 5)))


def ca_forward(x, params):
    """CA forward. x: (N, C, D, H, W) float32, params from init_ca_params."""
    N, C, D, H, W = x.shape
    (w1, b1, bn_scale, bn_shift, wd, bd, wh, bh, ww, bw) = params
    assert wd.shape[0] == C, "oup must equal inp for the final broadcast multiply"
    HW = H * W

    # Fold eval-mode BatchNorm + conv1 bias into a single affine (trace time).
    w1f = (bn_scale * w1).astype(jnp.float32)                  # (mip, C)
    b1f = (bn_scale * b1 + bn_shift).astype(jnp.float32)       # (mip, 1)

    # Constant 0/1 selection matrices (pool over W / over H); the kernel also
    # uses them transposed for the gate expansion, so only these two are needed.
    hw_idx = jnp.arange(HW)
    ph_mat = (hw_idx[:, None] // W == jnp.arange(H)[None, :]).astype(jnp.float32)  # (HW, H)
    pw_mat = (hw_idx[:, None] % W == jnp.arange(W)[None, :]).astype(jnp.float32)   # (HW, W)

    # Lane-dense layout: trailing dim is H*W.
    x2 = x.reshape(N, C, D, HW)

    tc = _pick_channel_chunk(C, D, HW, itemsize=x.dtype.itemsize)
    n_chunks = C // tc
    block_bytes = tc * D * HW * x.dtype.itemsize
    vmem_limit = _vmem_limit_bytes(block_bytes, C, D, HW)

    weight_args = (w1f, b1f, wd, bd, wh, bh, ww, bw, ph_mat, pw_mat)

    def full_spec(a):
        nd = a.ndim
        return pl.BlockSpec(a.shape, lambda n, k, _nd=nd: (0,) * _nd)

    # ---- Pass 1: pools + gates -------------------------------------------
    gate_d, gate_hw = pl.pallas_call(
        functools.partial(_pool_gate_kernel, D=D, H=H, W=W),
        out_shape=(jax.ShapeDtypeStruct((N, C, D), jnp.float32),
                   jax.ShapeDtypeStruct((N, C, HW), jnp.float32)),
        grid=(N, n_chunks),
        in_specs=[pl.BlockSpec((None, tc, D, HW), lambda n, k: (n, k, 0, 0))]
                 + [full_spec(a) for a in weight_args],
        out_specs=(pl.BlockSpec((None, C, D), lambda n, k: (n, 0, 0)),
                   pl.BlockSpec((None, C, HW), lambda n, k: (n, 0, 0))),
        compiler_params=pltpu.CompilerParams(
            dimension_semantics=("parallel", "arbitrary"),
            vmem_limit_bytes=vmem_limit),
    )(x2, *weight_args)

    # ---- Pass 2: gated multiply (fully parallel) ---------------------------
    out2 = pl.pallas_call(
        _apply_kernel,
        out_shape=jax.ShapeDtypeStruct((N, C, D, HW), x.dtype),
        grid=(N, n_chunks),
        in_specs=[pl.BlockSpec((None, tc, D, HW), lambda n, k: (n, k, 0, 0)),
                  pl.BlockSpec((None, tc, D), lambda n, k: (n, k, 0)),
                  pl.BlockSpec((None, tc, HW), lambda n, k: (n, k, 0))],
        out_specs=pl.BlockSpec((None, tc, D, HW), lambda n, k: (n, k, 0, 0)),
        compiler_params=pltpu.CompilerParams(
            dimension_semantics=("parallel", "parallel"),
            vmem_limit_bytes=vmem_limit),
    )(x2, gate_d, gate_hw)

    return out2.reshape(N, C, D, H, W)


def init_ca_params(key, inp, oup, reduction=16):
    """Deterministic synthetic parameters matching CA.__init__ shapes."""
    mip = max(8, inp // reduction)
    ks = jax.random.split(key, 10)
    w1 = jax.random.normal(ks[0], (mip, inp), jnp.float32) * 0.2
    b1 = jax.random.normal(ks[1], (mip, 1), jnp.float32) * 0.1
    gamma = 1.0 + 0.1 * jax.random.normal(ks[2], (mip, 1), jnp.float32)
    beta = 0.1 * jax.random.normal(ks[3], (mip, 1), jnp.float32)
    running_mean = jnp.zeros((mip, 1), jnp.float32)
    running_var = jnp.ones((mip, 1), jnp.float32)
    eps = 1e-5
    bn_scale = gamma / jnp.sqrt(running_var + eps)
    bn_shift = beta - running_mean * bn_scale
    wd = jax.random.normal(ks[4], (oup, mip), jnp.float32) * 0.2
    bd = jax.random.normal(ks[5], (oup, 1), jnp.float32) * 0.1
    wh = jax.random.normal(ks[6], (oup, mip), jnp.float32) * 0.2
    bh = jax.random.normal(ks[7], (oup, 1), jnp.float32) * 0.1
    ww = jax.random.normal(ks[8], (oup, mip), jnp.float32) * 0.2
    bw = jax.random.normal(ks[9], (oup, 1), jnp.float32) * 0.1
    return (w1, b1, bn_scale, bn_shift, wd, bd, wh, bh, ww, bw)


def ca_ref(x, params):
    """Pure-JAX reference of the same forward (for verification)."""
    w1, b1, bns, bnb, wd, bd, wh, bh, ww, bw = params
    N, C, D, H, W = x.shape
    xd = x.mean(axis=(3, 4))                    # (N, C, D)
    xh = x.mean(axis=(2, 4))                    # (N, C, H)
    xw = x.mean(axis=(2, 3))                    # (N, C, W)
    y = jnp.concatenate([xd, xh, xw], axis=2)   # (N, C, D+H+W)
    y1 = jnp.einsum('mc,ncl->nml', w1, y) + b1[None]
    y1 = y1 * bns[None] + bnb[None]
    y1 = y1 * jnp.clip(y1 + 3.0, 0.0, 6.0) / 6.0
    yd, yh, yw = y1[:, :, :D], y1[:, :, D:D + H], y1[:, :, D + H:]
    ad = jax.nn.sigmoid(jnp.einsum('om,nml->nol', wd, yd) + bd[None])
    ah = jax.nn.sigmoid(jnp.einsum('om,nml->nol', wh, yh) + bh[None])
    aw = jax.nn.sigmoid(jnp.einsum('om,nml->nol', ww, yw) + bw[None])
    return (x * ad[:, :, :, None, None]
              * aw[:, :, None, None, :]
              * ah[:, :, None, :, None])


if __name__ == "__main__":
    key = jax.random.PRNGKey(0)
    kx, kp = jax.random.split(key)

    # Small shapes: batch=2, channels=4 (inp=oup=4 -> mip=8), d=8, h=16, w=16.
    N, C, D, H, W = 2, 4, 8, 16, 16
    x = jax.random.normal(kx, (N, C, D, H, W), jnp.float32)
    params = init_ca_params(kp, inp=C, oup=C, reduction=16)

    out = ca_forward(x, params)
    out = jax.block_until_ready(out)

    ref = ca_ref(x, params)
    np.testing.assert_allclose(np.asarray(out), np.asarray(ref), rtol=1e-4, atol=1e-4)
    print("KERNEL_OK")
</pallas_src>

<mosaic_0001>
module attributes {stable_mosaic.version = 11 : i64} {
  func.func @_pool_gate_kernel(%arg0: i32, %arg1: i32, %arg2: memref<1x4x8x256xf32, #tpu.memory_space<vmem>>, %arg3: memref<8x4xf32, #tpu.memory_space<vmem>>, %arg4: memref<8x1xf32, #tpu.memory_space<vmem>>, %arg5: memref<4x8xf32, #tpu.memory_space<vmem>>, %arg6: memref<4x1xf32, #tpu.memory_space<vmem>>, %arg7: memref<4x8xf32, #tpu.memory_space<vmem>>, %arg8: memref<4x1xf32, #tpu.memory_space<vmem>>, %arg9: memref<4x8xf32, #tpu.memory_space<vmem>>, %arg10: memref<4x1xf32, #tpu.memory_space<vmem>>, %arg11: memref<256x16xf32, #tpu.memory_space<vmem>>, %arg12: memref<256x16xf32, #tpu.memory_space<vmem>>, %arg13: memref<1x4x8xf32, #tpu.memory_space<vmem>>, %arg14: memref<1x4x256xf32, #tpu.memory_space<vmem>>) attributes {dimension_semantics = [#tpu.dimension_semantics<parallel>, #tpu.dimension_semantics<arbitrary>], iteration_bounds = array<i64: 2, 1>, scalar_prefetch = 0 : i64, scratch_operands = 0 : i64, tpu.core_type = #tpu.core_type<tc>, window_params = [{transform_indices = @transform_0, window_bounds = array<i64: 1, 4, 8, 256>}, {pipeline_mode = #tpu.pipeline_mode<synchronous>, transform_indices = @transform_1, window_bounds = array<i64: 8, 4>}, {pipeline_mode = #tpu.pipeline_mode<synchronous>, transform_indices = @transform_2, window_bounds = array<i64: 8, 1>}, {pipeline_mode = #tpu.pipeline_mode<synchronous>, transform_indices = @transform_3, window_bounds = array<i64: 4, 8>}, {pipeline_mode = #tpu.pipeline_mode<synchronous>, transform_indices = @transform_4, window_bounds = array<i64: 4, 1>}, {pipeline_mode = #tpu.pipeline_mode<synchronous>, transform_indices = @transform_5, window_bounds = array<i64: 4, 8>}, {pipeline_mode = #tpu.pipeline_mode<synchronous>, transform_indices = @transform_6, window_bounds = array<i64: 4, 1>}, {pipeline_mode = #tpu.pipeline_mode<synchronous>, transform_indices = @transform_7, window_bounds = array<i64: 4, 8>}, {pipeline_mode = #tpu.pipeline_mode<synchronous>, transform_indices = @transform_8, window_bounds = array<i64: 4, 1>}, {pipeline_mode = #tpu.pipeline_mode<synchronous>, transform_indices = @transform_9, window_bounds = array<i64: 256, 16>}, {pipeline_mode = #tpu.pipeline_mode<synchronous>, transform_indices = @transform_10, window_bounds = array<i64: 256, 16>}, {transform_indices = @transform_11, window_bounds = array<i64: 1, 4, 8>}, {transform_indices = @transform_12, window_bounds = array<i64: 1, 4, 256>}]} {
    %c4_i32 = arith.constant 4 : i32
    %0 = arith.muli %arg1, %c4_i32 : i32
    %1 = tpu.assume_multiple %0, 4 : i32
    %c0 = arith.constant 0 : index
    %c0_0 = arith.constant 0 : index
    %c0_1 = arith.constant 0 : index
    %c0_2 = arith.constant 0 : index
    %2 = vector.load %arg2[%c0, %c0_0, %c0_1, %c0_2] : memref<1x4x8x256xf32, #tpu.memory_space<vmem>>, vector<1x4x8x256xf32>
    %3 = vector.shape_cast %2 : vector<1x4x8x256xf32> to vector<4x8x256xf32>
    %cst = arith.constant dense<0.000000e+00> : vector<4x8xf32>
    %4 = vector.multi_reduction <add>, %3, %cst [2] : vector<4x8x256xf32> to vector<4x8xf32>
    %c0_3 = arith.constant 0 : index
    %5 = arith.index_cast %1 : i32 to index
    %c0_4 = arith.constant 0 : index
    %6 = vector.load %arg13[%c0_3, %5, %c0_4] : memref<1x4x8xf32, #tpu.memory_space<vmem>>, vector<1x4x8xf32>
    %7 = vector.shape_cast %6 : vector<1x4x8xf32> to vector<4x8xf32>
    %8 = vector.shape_cast %4 : vector<4x8xf32> to vector<1x4x8xf32>
    tpu.vector_store %arg13[%c0_3, %5, %c0_4], %8 {strides = array<i32>} : memref<1x4x8xf32, #tpu.memory_space<vmem>>, vector<1x4x8xf32>,
    %cst_5 = arith.constant dense<0.000000e+00> : vector<4x256xf32>
    %9 = vector.multi_reduction <add>, %3, %cst_5 [1] : vector<4x8x256xf32> to vector<4x256xf32>
    %c0_6 = arith.constant 0 : index
    %10 = arith.index_cast %1 : i32 to index
    %c0_7 = arith.constant 0 : index
    %11 = vector.load %arg14[%c0_6, %10, %c0_7] : memref<1x4x256xf32, #tpu.memory_space<vmem>>, vector<1x4x256xf32>
    %12 = vector.shape_cast %11 : vector<1x4x256xf32> to vector<4x256xf32>
    %13 = vector.shape_cast %9 : vector<4x256xf32> to vector<1x4x256xf32>
    tpu.vector_store %arg14[%c0_6, %10, %c0_7], %13 {strides = array<i32>} : memref<1x4x256xf32, #tpu.memory_space<vmem>>, vector<1x4x256xf32>,
    %c0_i32 = arith.constant 0 : i32
    %14 = arith.cmpi eq, %arg1, %c0_i32 : i32
    %15 = arith.extui %14 : i1 to i32
    %c0_i32_8 = arith.constant 0 : i32
    %16 = arith.cmpi ne, %15, %c0_i32_8 : i32
    scf.if %16 {
      %c0_9 = arith.constant 0 : index
      %c0_10 = arith.constant 0 : index
      %c0_11 = arith.constant 0 : index
      %17 = vector.load %arg14[%c0_9, %c0_10, %c0_11] : memref<1x4x256xf32, #tpu.memory_space<vmem>>, vector<1x4x256xf32>
      %18 = vector.shape_cast %17 : vector<1x4x256xf32> to vector<4x256xf32>
      %c0_12 = arith.constant 0 : index
      %c0_13 = arith.constant 0 : index
      %c0_14 = arith.constant 0 : index
      %19 = vector.load %arg13[%c0_12, %c0_13, %c0_14] : memref<1x4x8xf32, #tpu.memory_space<vmem>>, vector<1x4x8xf32>
      %20 = vector.shape_cast %19 : vector<1x4x8xf32> to vector<4x8xf32>
      %cst_15 = arith.constant 3.906250e-03 : f32
      %21 = vector.broadcast %cst_15 : f32 to vector<4x8xf32>
      %22 = arith.mulf %20, %21 : vector<4x8xf32>
      %c0_16 = arith.constant 0 : index
      %c0_17 = arith.constant 0 : index
      %23 = vector.load %arg11[%c0_16, %c0_17] : memref<256x16xf32, #tpu.memory_space<vmem>>, vector<256x16xf32>
      %cst_18 = arith.constant dense<0.000000e+00> : vector<4x16xf32>
      %24 = tpu.matmul %18, %23, %cst_18 {dimension_numbers = #tpu.dot_dimension_numbers<[1], [0], [0], [1], [0, 0, 1, 1], [], []>} : vector<4x256xf32>, vector<256x16xf32>, vector<4x16xf32> -> vector<4x16xf32>
      %cst_19 = arith.constant 7.812500e-03 : f32
      %25 = vector.broadcast %cst_19 : f32 to vector<4x16xf32>
      %26 = arith.mulf %24, %25 : vector<4x16xf32>
      %c0_20 = arith.constant 0 : index
      %c0_21 = arith.constant 0 : index
      %27 = vector.load %arg12[%c0_20, %c0_21] : memref<256x16xf32, #tpu.memory_space<vmem>>, vector<256x16xf32>
      %cst_22 = arith.constant dense<0.000000e+00> : vector<4x16xf32>
      %28 = tpu.matmul %18, %27, %cst_22 {dimension_numbers = #tpu.dot_dimension_numbers<[1], [0], [0], [1], [0, 0, 1, 1], [], []>} : vector<4x256xf32>, vector<256x16xf32>, vector<4x16xf32> -> vector<4x16xf32>
      %cst_23 = arith.constant 7.812500e-03 : f32
      %29 = vector.broadcast %cst_23 : f32 to vector<4x16xf32>
      %30 = arith.mulf %28, %29 : vector<4x16xf32>
      %31 = tpu.concatenate %22, %26, %30 in 1 : vector<4x8xf32>, vector<4x16xf32>, vector<4x16xf32> -> vector<4x40xf32>
      %c0_24 = arith.constant 0 : index
      %c0_25 = arith.constant 0 : index
      %32 = vector.load %arg3[%c0_24, %c0_25] : memref<8x4xf32, #tpu.memory_space<vmem>>, vector<8x4xf32>
      %cst_26 = arith.constant dense<0.000000e+00> : vector<8x40xf32>
      %33 = tpu.matmul %32, %31, %cst_26 {dimension_numbers = #tpu.dot_dimension_numbers<[1], [0], [0], [1], [0, 0, 1, 1], [], []>} : vector<8x4xf32>, vector<4x40xf32>, vector<8x40xf32> -> vector<8x40xf32>
      %c0_27 = arith.constant 0 : index
      %c0_28 = arith.constant 0 : index
      %34 = vector.load %arg4[%c0_27, %c0_28] : memref<8x1xf32, #tpu.memory_space<vmem>>, vector<8x1xf32>
      %35 = vector.broadcast %34 : vector<8x1xf32> to vector<8x40xf32>
      %36 = arith.addf %33, %35 : vector<8x40xf32>
      %cst_29 = arith.constant 3.000000e+00 : f32
      %37 = vector.broadcast %cst_29 : f32 to vector<8x40xf32>
      %38 = arith.addf %36, %37 : vector<8x40xf32>
      %cst_30 = arith.constant 0.000000e+00 : f32
      %cst_31 = arith.constant 6.000000e+00 : f32
      %39 = vector.broadcast %cst_30 : f32 to vector<8x40xf32>
      %40 = arith.maximumf %39, %38 : vector<8x40xf32>
      %41 = vector.broadcast %cst_31 : f32 to vector<8x40xf32>
      %42 = arith.minimumf %41, %40 : vector<8x40xf32>
      %43 = arith.mulf %36, %42 : vector<8x40xf32>
      %cst_32 = arith.constant 0.166666672 : f32
      %44 = vector.broadcast %cst_32 : f32 to vector<8x40xf32>
      %45 = arith.mulf %43, %44 : vector<8x40xf32>
      %c0_33 = arith.constant 0 : index
      %c0_34 = arith.constant 0 : index
      %46 = vector.load %arg5[%c0_33, %c0_34] : memref<4x8xf32, #tpu.memory_space<vmem>>, vector<4x8xf32>
      %47 = vector.extract_strided_slice %45 {offsets = [0, 0], sizes = [8, 8], strides = [1, 1]} : vector<8x40xf32> to vector<8x8xf32>
      %cst_35 = arith.constant dense<0.000000e+00> : vector<4x8xf32>
      %48 = tpu.matmul %46, %47, %cst_35 {dimension_numbers = #tpu.dot_dimension_numbers<[1], [0], [0], [1], [0, 0, 1, 1], [], []>} : vector<4x8xf32>, vector<8x8xf32>, vector<4x8xf32> -> vector<4x8xf32>
      %c0_36 = arith.constant 0 : index
      %c0_37 = arith.constant 0 : index
      %49 = vector.load %arg6[%c0_36, %c0_37] : memref<4x1xf32, #tpu.memory_space<vmem>>, vector<4x1xf32>
      %50 = vector.broadcast %49 : vector<4x1xf32> to vector<4x8xf32>
      %51 = arith.addf %48, %50 : vector<4x8xf32>
      %52 = math.absf %51 : vector<4x8xf32>
      %cst_38 = arith.constant 0.000000e+00 : f32
      %53 = vector.broadcast %cst_38 : f32 to vector<4x8xf32>
      %54 = arith.subf %53, %52 : vector<4x8xf32>
      %55 = math.exp %54 : vector<4x8xf32>
      %cst_39 = arith.constant 0.000000e+00 : f32
      %56 = vector.broadcast %cst_39 : f32 to vector<4x8xf32>
      %57 = arith.cmpf oge, %51, %56 : vector<4x8xf32>
      %cst_40 = arith.constant 1.000000e+00 : f32
      %58 = vector.broadcast %cst_40 : f32 to vector<4x8xf32>
      %59 = arith.addf %58, %55 : vector<4x8xf32>
      %cst_41 = arith.constant 1.000000e+00 : f32
      %60 = vector.broadcast %cst_41 : f32 to vector<4x8xf32>
      %61 = arith.divf %60, %59 : vector<4x8xf32>
      %cst_42 = arith.constant 1.000000e+00 : f32
      %62 = vector.broadcast %cst_42 : f32 to vector<4x8xf32>
      %63 = arith.addf %62, %55 : vector<4x8xf32>
      %64 = arith.divf %55, %63 : vector<4x8xf32>
      %65 = arith.select %57, %61, %64 : vector<4x8xi1>, vector<4x8xf32>
      %c0_43 = arith.constant 0 : index
      %c0_44 = arith.constant 0 : index
      %66 = vector.load %arg7[%c0_43, %c0_44] : memref<4x8xf32, #tpu.memory_space<vmem>>, vector<4x8xf32>
      %67 = vector.extract_strided_slice %45 {offsets = [0, 8], sizes = [8, 16], strides = [1, 1]} : vector<8x40xf32> to vector<8x16xf32>
      %cst_45 = arith.constant dense<0.000000e+00> : vector<4x16xf32>
      %68 = tpu.matmul %66, %67, %cst_45 {dimension_numbers = #tpu.dot_dimension_numbers<[1], [0], [0], [1], [0, 0, 1, 1], [], []>} : vector<4x8xf32>, vector<8x16xf32>, vector<4x16xf32> -> vector<4x16xf32>
      %c0_46 = arith.constant 0 : index
      %c0_47 = arith.constant 0 : index
      %69 = vector.load %arg8[%c0_46, %c0_47] : memref<4x1xf32, #tpu.memory_space<vmem>>, vector<4x1xf32>
      %70 = vector.broadcast %69 : vector<4x1xf32> to vector<4x16xf32>
      %71 = arith.addf %68, %70 : vector<4x16xf32>
      %72 = math.absf %71 : vector<4x16xf32>
      %cst_48 = arith.constant 0.000000e+00 : f32
      %73 = vector.broadcast %cst_48 : f32 to vector<4x16xf32>
      %74 = arith.subf %73, %72 : vector<4x16xf32>
      %75 = math.exp %74 : vector<4x16xf32>
      %cst_49 = arith.constant 0.000000e+00 : f32
      %76 = vector.broadcast %cst_49 : f32 to vector<4x16xf32>
      %77 = arith.cmpf oge, %71, %76 : vector<4x16xf32>
      %cst_50 = arith.constant 1.000000e+00 : f32
      %78 = vector.broadcast %cst_50 : f32 to vector<4x16xf32>
      %79 = arith.addf %78, %75 : vector<4x16xf32>
      %cst_51 = arith.constant 1.000000e+00 : f32
      %80 = vector.broadcast %cst_51 : f32 to vector<4x16xf32>
      %81 = arith.divf %80, %79 : vector<4x16xf32>
      %cst_52 = arith.constant 1.000000e+00 : f32
      %82 = vector.broadcast %cst_52 : f32 to vector<4x16xf32>
      %83 = arith.addf %82, %75 : vector<4x16xf32>
      %84 = arith.divf %75, %83 : vector<4x16xf32>
      %85 = arith.select %77, %81, %84 : vector<4x16xi1>, vector<4x16xf32>
      %c0_53 = arith.constant 0 : index
      %c0_54 = arith.constant 0 : index
      %86 = vector.load %arg9[%c0_53, %c0_54] : memref<4x8xf32, #tpu.memory_space<vmem>>, vector<4x8xf32>
      %87 = vector.extract_strided_slice %45 {offsets = [0, 24], sizes = [8, 16], strides = [1, 1]} : vector<8x40xf32> to vector<8x16xf32>
      %cst_55 = arith.constant dense<0.000000e+00> : vector<4x16xf32>
      %88 = tpu.matmul %86, %87, %cst_55 {dimension_numbers = #tpu.dot_dimension_numbers<[1], [0], [0], [1], [0, 0, 1, 1], [], []>} : vector<4x8xf32>, vector<8x16xf32>, vector<4x16xf32> -> vector<4x16xf32>
      %c0_56 = arith.constant 0 : index
      %c0_57 = arith.constant 0 : index
      %89 = vector.load %arg10[%c0_56, %c0_57] : memref<4x1xf32, #tpu.memory_space<vmem>>, vector<4x1xf32>
      %90 = vector.broadcast %89 : vector<4x1xf32> to vector<4x16xf32>
      %91 = arith.addf %88, %90 : vector<4x16xf32>
      %92 = math.absf %91 : vector<4x16xf32>
      %cst_58 = arith.constant 0.000000e+00 : f32
      %93 = vector.broadcast %cst_58 : f32 to vector<4x16xf32>
      %94 = arith.subf %93, %92 : vector<4x16xf32>
      %95 = math.exp %94 : vector<4x16xf32>
      %cst_59 = arith.constant 0.000000e+00 : f32
      %96 = vector.broadcast %cst_59 : f32 to vector<4x16xf32>
      %97 = arith.cmpf oge, %91, %96 : vector<4x16xf32>
      %cst_60 = arith.constant 1.000000e+00 : f32
      %98 = vector.broadcast %cst_60 : f32 to vector<4x16xf32>
      %99 = arith.addf %98, %95 : vector<4x16xf32>
      %cst_61 = arith.constant 1.000000e+00 : f32
      %100 = vector.broadcast %cst_61 : f32 to vector<4x16xf32>
      %101 = arith.divf %100, %99 : vector<4x16xf32>
      %cst_62 = arith.constant 1.000000e+00 : f32
      %102 = vector.broadcast %cst_62 : f32 to vector<4x16xf32>
      %103 = arith.addf %102, %95 : vector<4x16xf32>
      %104 = arith.divf %95, %103 : vector<4x16xf32>
      %105 = arith.select %97, %101, %104 : vector<4x16xi1>, vector<4x16xf32>
      %c0_63 = arith.constant 0 : index
      %c0_64 = arith.constant 0 : index
      %106 = vector.load %arg11[%c0_63, %c0_64] : memref<256x16xf32, #tpu.memory_space<vmem>>, vector<256x16xf32>
      %cst_65 = arith.constant dense<0.000000e+00> : vector<4x256xf32>
      %107 = tpu.matmul %85, %106, %cst_65 {dimension_numbers = #tpu.dot_dimension_numbers<[1], [1], [0], [0], [0, 0, 1, 0], [], []>} : vector<4x16xf32>, vector<256x16xf32>, vector<4x256xf32> -> vector<4x256xf32>
      %c0_66 = arith.constant 0 : index
      %c0_67 = arith.constant 0 : index
      %108 = vector.load %arg12[%c0_66, %c0_67] : memref<256x16xf32, #tpu.memory_space<vmem>>, vector<256x16xf32>
      %cst_68 = arith.constant dense<0.000000e+00> : vector<4x256xf32>
      %109 = tpu.matmul %105, %108, %cst_68 {dimension_numbers = #tpu.dot_dimension_numbers<[1], [1], [0], [0], [0, 0, 1, 0], [], []>} : vector<4x16xf32>, vector<256x16xf32>, vector<4x256xf32> -> vector<4x256xf32>
      %110 = arith.mulf %107, %109 : vector<4x256xf32>
      %c0_69 = arith.constant 0 : index
      %c0_70 = arith.constant 0 : index
      %c0_71 = arith.constant 0 : index
      %111 = vector.load %arg14[%c0_69, %c0_70, %c0_71] : memref<1x4x256xf32, #tpu.memory_space<vmem>>, vector<1x4x256xf32>
      %112 = vector.shape_cast %111 : vector<1x4x256xf32> to vector<4x256xf32>
      %113 = vector.shape_cast %110 : vector<4x256xf32> to vector<1x4x256xf32>
      tpu.vector_store %arg14[%c0_69, %c0_70, %c0_71], %113 {strides = array<i32>} : memref<1x4x256xf32, #tpu.memory_space<vmem>>, vector<1x4x256xf32>,
      %c0_72 = arith.constant 0 : index
      %c0_73 = arith.constant 0 : index
      %c0_74 = arith.constant 0 : index
      %114 = vector.load %arg13[%c0_72, %c0_73, %c0_74] : memref<1x4x8xf32, #tpu.memory_space<vmem>>, vector<1x4x8xf32>
      %115 = vector.shape_cast %114 : vector<1x4x8xf32> to vector<4x8xf32>
      %116 = vector.shape_cast %65 : vector<4x8xf32> to vector<1x4x8xf32>
      tpu.vector_store %arg13[%c0_72, %c0_73, %c0_74], %116 {strides = array<i32>} : memref<1x4x8xf32, #tpu.memory_space<vmem>>, vector<1x4x8xf32>,
    } else {
    }
    return
  }
  func.func @transform_0(%arg0: i32, %arg1: i32) -> (i32, i32, i32, i32) {
    %c0_i32 = arith.constant 0 : i32
    %c0_i32_0 = arith.constant 0 : i32
    %c0_i32_1 = arith.constant 0 : i32
    return %arg0, %arg1, %c0_i32, %c0_i32_0 : i32, i32, i32, i32
  }
  func.func @transform_1(%arg0: i32, %arg1: i32) -> (i32, i32) {
    %c0_i32 = arith.constant 0 : i32
    %c0_i32_0 = arith.constant 0 : i32
    %c0_i32_1 = arith.constant 0 : i32
    return %c0_i32, %c0_i32_0 : i32, i32
  }
  func.func @transform_2(%arg0: i32, %arg1: i32) -> (i32, i32) {
    %c0_i32 = arith.constant 0 : i32
    %c0_i32_0 = arith.constant 0 : i32
    %c0_i32_1 = arith.constant 0 : i32
    return %c0_i32, %c0_i32_0 : i32, i32
  }
  func.func @transform_3(%arg0: i32, %arg1: i32) -> (i32, i32) {
    %c0_i32 = arith.constant 0 : i32
    %c0_i32_0 = arith.constant 0 : i32
    %c0_i32_1 = arith.constant 0 : i32
    return %c0_i32, %c0_i32_0 : i32, i32
  }
  func.func @transform_4(%arg0: i32, %arg1: i32) -> (i32, i32) {
    %c0_i32 = arith.constant 0 : i32
    %c0_i32_0 = arith.constant 0 : i32
    %c0_i32_1 = arith.constant 0 : i32
    return %c0_i32, %c0_i32_0 : i32, i32
  }
  func.func @transform_5(%arg0: i32, %arg1: i32) -> (i32, i32) {
    %c0_i32 = arith.constant 0 : i32
    %c0_i32_0 = arith.constant 0 : i32
    %c0_i32_1 = arith.constant 0 : i32
    return %c0_i32, %c0_i32_0 : i32, i32
  }
  func.func @transform_6(%arg0: i32, %arg1: i32) -> (i32, i32) {
    %c0_i32 = arith.constant 0 : i32
    %c0_i32_0 = arith.constant 0 : i32
    %c0_i32_1 = arith.constant 0 : i32
    return %c0_i32, %c0_i32_0 : i32, i32
  }
  func.func @transform_7(%arg0: i32, %arg1: i32) -> (i32, i32) {
    %c0_i32 = arith.constant 0 : i32
    %c0_i32_0 = arith.constant 0 : i32
    %c0_i32_1 = arith.constant 0 : i32
    return %c0_i32, %c0_i32_0 : i32, i32
  }
  func.func @transform_8(%arg0: i32, %arg1: i32) -> (i32, i32) {
    %c0_i32 = arith.constant 0 : i32
    %c0_i32_0 = arith.constant 0 : i32
    %c0_i32_1 = arith.constant 0 : i32
    return %c0_i32, %c0_i32_0 : i32, i32
  }
  func.func @transform_9(%arg0: i32, %arg1: i32) -> (i32, i32) {
    %c0_i32 = arith.constant 0 : i32
    %c0_i32_0 = arith.constant 0 : i32
    %c0_i32_1 = arith.constant 0 : i32
    return %c0_i32, %c0_i32_0 : i32, i32
  }
  func.func @transform_10(%arg0: i32, %arg1: i32) -> (i32, i32) {
    %c0_i32 = arith.constant 0 : i32
    %c0_i32_0 = arith.constant 0 : i32
    %c0_i32_1 = arith.constant 0 : i32
    return %c0_i32, %c0_i32_0 : i32, i32
  }
  func.func @transform_11(%arg0: i32, %arg1: i32) -> (i32, i32, i32) {
    %c0_i32 = arith.constant 0 : i32
    %c0_i32_0 = arith.constant 0 : i32
    %c0_i32_1 = arith.constant 0 : i32
    return %arg0, %c0_i32, %c0_i32_0 : i32, i32, i32
  }
  func.func @transform_12(%arg0: i32, %arg1: i32) -> (i32, i32, i32) {
    %c0_i32 = arith.constant 0 : i32
    %c0_i32_0 = arith.constant 0 : i32
    %c0_i32_1 = arith.constant 0 : i32
    return %arg0, %c0_i32, %c0_i32_0 : i32, i32, i32
  }
}

</mosaic_0001>

<bundles_post_ra>
// kernel: tpu_custom_call.1
= control target key start
LH: loop header
LB: loop body
LE: loop exit
PB: predicated region body
PF: predicated region fallthrough
CT: control target
= control target key end

     0   :  { %18 = vsyncpa [#allocation3], 0  ;;  %s2958_s0 = inlined_call_operand.vmem [shape: f32[2,4,8,256], index: 0, kind: input, shape index: {}]   ;;  %s2959_s1 = inlined_call_operand.vmem [shape: f32[8,4], index: 1, kind: input, shape index: {}]   ;;  %s2960_s2 = inlined_call_operand.vmem [shape: f32[8,1], index: 2, kind: input, shape index: {}]   ;;  %s2961_s3 = inlined_call_operand.vmem [shape: f32[4,8], index: 3, kind: input, shape index: {}]   ;;  %s2962_s4 = inlined_call_operand.vmem [shape: f32[4,1], index: 4, kind: input, shape index: {}]   ;;  %s2963_s5 = inlined_call_operand.vmem [shape: f32[4,8], index: 5, kind: input, shape index: {}]   ;;  %s2964_s6 = inlined_call_operand.vmem [shape: f32[4,1], index: 6, kind: input, shape index: {}]   ;;  %s2965_s7 = inlined_call_operand.vmem [shape: f32[4,8], index: 7, kind: input, shape index: {}]   ;;  %s2966_s8 = inlined_call_operand.vmem [shape: f32[4,1], index: 8, kind: input, shape index: {}]   ;;  %s2967_s9 = inlined_call_operand.vmem [shape: f32[256,16], index: 9, kind: input, shape index: {}]   ;;  %s2968_s10 = inlined_call_operand.vmem [shape: f32[256,16], index: 10, kind: input, shape index: {}]   ;;  %s2969_s11 = inlined_call_operand.hbm [shape: f32[2,4,8], index: 11, kind: output, shape index: {0}]   ;;  %s2970_s12 = inlined_call_operand.hbm [shape: f32[2,4,256], index: 12, kind: output, shape index: {1}]  }
   0x1   :  { %20 = vsyncpa [#allocation3 + $0x1], 0 }
   0x2   :  { %21 = vsyncpa [#allocation5], 0 }
   0x3   :  { %23 = vsyncpa [#allocation5 + $0x1], 0  ;;  %s2357_s21 = smov 0   ;;  %s2359_s22 = smov 0  }
   0x4   :  { %s2361_s23 = smov 0   ;;  %s2363_s24 = smov 0  }
   0x5   :  { %s2365_s25 = smov 0   ;;  %s2367_s26 = smov 0  }
   0x6 LB: > { %2976 = sst [smem:[#allocation8_spill]] %s2269_s23  ;;  %s1675_s27 = sadd.s32 4294967295, %s2281_s26   ;;  %s2281_s26 = sphi %s2367_s26, %s29_s26   ;;  %s2277_s25 = sphi %s2365_s25, %s2991_s25   ;;  %s2273_s24 = sphi %s2363_s24, %s2990_s24   ;;  %s2269_s23 = sphi %s2361_s23, %s2989_s23   ;;  %s2265_s22 = sphi %s2359_s22, %s2993_s22   ;;  %s2261_s21 = sphi %s2357_s21, %s2992_s21  }
   0x7   : > { %2977 = sst [smem:[#allocation9_spill]] %s2277_s25  ;;  %s1676_s28 = sadd.s32 4294967294, %s2281_s26  }
   0x8   : > { %s41_s29 = sadd.s32 1, %s2277_s25  ;;  %s286_s30 = sadd.s32 1, %s2269_s23 }
   0x9   : > { %p43_p0 = scmp.ge.s32.totalorder %s41_s29, 2  ;;  %p296_p1 = scmp.ne.s32.totalorder %s2269_s23, %s2265_s22 }
   0xa   : > { %p297_p2 = scmp.eq.s32.totalorder %s1675_s27, 1  ;;  %p302_p3 = scmp.ne.s32.totalorder %s2265_s22, %s2261_s21 }
   0xb   : > { %s2995_s29 = smov (%p43_p0, %s41_s29), 0  ;;  %p303_p5 = scmp.eq.s32.totalorder %s1676_s28, 1 }
   0xc   : > { %2978 = sst [smem:[#allocation10_spill]] %s2995_s29  ;;  %p2397_p4 = por %p297_p2, %p296_p1 }
   0xd   : > { %s283_s14 = ssub.s32 %s2277_s25, %s2995_s29  ;;  %p1679_p6 = scmp.ge.s32.totalorder %s2281_s26, 1 }
   0xe   : > { %p284_p7 = scmp.eq.s32.totalorder %s283_s14, 0  ;;  %p2404_p8 = por %p303_p5, %p302_p3 }
   0xf   : > { %p391_p9 = scmp.lt.s32.totalorder %s2281_s26, 3 }
  0x10   : > { %s2980_s15 = scalar_select %p2404_p8, 1, 0 }
  0x11   : > { %s2410_s16 = scalar_select %p284_p7, %s2269_s23, %s286_s30  }
  0x12   : > { %2981 = sst [smem:[#allocation11_spill]] %s2980_s15  ;;  %p392_p10 = pnand %p1679_p6, %p391_p9 }
  0x13   : > { %2982 = sst [smem:[#allocation12_spill]] %s2410_s16 }
  0x14   : > { %395 = sbr.rel (%p392_p10) target bundleno = 1230 (0x4ce), region = 64 }
  0x1b   : > { %v609_v0 = vld [vmem:[%s2967_s9 + $0x80] sm:$0xff]  ;;  %v610_v1 = vld [vmem:[%s2967_s9 + $0x88] sm:$0xff]  ;;  %v611_v11 = vld [vmem:[%s2967_s9 + $0x90] sm:$0xff]  ;;  %p444_p11 = scmp.lt.s32.totalorder %s2273_s24, 1  ;;  %vm497_vm0 = vcmask 1041409   ;;  %vm569_vm1 = vcmask 1045509  }
  0x1c   : > { %v715_v2 = vld [vmem:[%s2968_s10 + $0x80] sm:$0xff]  ;;  %v2421_v3 = vpack.c.bf16 %v610_v1, %v609_v0  ;;  %v716_v4 = vld [vmem:[%s2968_s10 + $0x88] sm:$0xff]  ;;  %v612_v13 = vld [vmem:[%s2967_s9 + $0x98] sm:$0xff]  ;;  %vm499_vm2 = vcmask 1042434   ;;  %vm573_vm3 = vcmask 1046534   ;;  %vm501_vm4 = vcmask 1043459  }
  0x1d   : > { %v593_v5 = vld [vmem:[%s2967_s9] sm:$0xff]  ;;  %v594_v6 = vld [vmem:[%s2967_s9 + $0x8] sm:$0xff]  ;;  %v2432_v7 = vpack.c.bf16 %v716_v4, %v715_v2  ;;  %v717_v14 = vld [vmem:[%s2968_s10 + $0x90] sm:$0xff]  ;;  %v2459_v16 = vpack.c.bf16 %v612_v13, %v611_v11  ;;  %s2574_s29 = scalar_select %p444_p11, %s2273_s24, 1  ;;  %vm577_vm5 = vcmask 1047559   ;;  %vm505_vm6 = vcmask 60416  }
  0x1e   : > { %v2434_v8 = vpack.c.bf16 %v594_v6, %v593_v5  ;;  %v699_v9 = vld [vmem:[%s2968_s10] sm:$0xff]  ;;  %v700_v10 = vld [vmem:[%s2968_s10 + $0x8] sm:$0xff]  ;;  %1931 = vmatprep.subr.bf16.mxu0 %v2421_v3  ;;  %v718_v15 = vld [vmem:[%s2968_s10 + $0x98] sm:$0xff]  ;;  %s2729_s17 = sand.u32 1, %s2265_s22   ;;  %vm2284_vm7 = vmmov 0   ;;  %s2286_s19 = smov 24  }
  0x1f   : > { %v2446_v12 = vpack.c.bf16 %v700_v10, %v699_v9  ;;  %1963 = vmatprep.subr.bf16.mxu1 %v2432_v7  ;;  %v2461_v17 = vpack.c.bf16 %v718_v15, %v717_v14  ;;  %v595_v18 = vld [vmem:[%s2967_s9 + $0x10] sm:$0xff]  ;;  %v596_v19 = vld [vmem:[%s2967_s9 + $0x18] sm:$0xff]  ;;  %v613_v23 = vld [vmem:[%s2967_s9 + $0xa0] sm:$0xff]  ;;  %s1762_s16 = sshll.u32 %s2574_s29, 6  ;;  %s1680_s18 = sshll.u32 %s2729_s17, 2  ;;  %vm810_vm8 = vcmask 64512  }
  0x20   : > { %1933 = vmatpush3.bf16.msra.mxu0 %v2434_v8  ;;  %v701_v20 = vld [vmem:[%s2968_s10 + $0x10] sm:$0xff]  ;;  %v2473_v21 = vpack.c.bf16 %v596_v19, %v595_v18  ;;  %v702_v22 = vld [vmem:[%s2968_s10 + $0x18] sm:$0xff]  ;;  %v614_v24 = vld [vmem:[%s2967_s9 + $0xa8] sm:$0xff]  ;;  %s452_s20 = scalar_lea.vmem %s2958_s0, %s1762_s16  ;;  %s2735_s29 = scalar_lea.vmem [#allocation2], %s1680_s18  ;;  %vm812_vm9 = vcmask 195584   ;;  %vm825_vm10 = vcmask 1043456  }
  0x21   : > { %1965 = vmatpush3.bf16.msra.mxu1 %v2446_v12  ;;  %1935 = vmatprep.subr.bf16.mxu0 %v2459_v16  ;;  %v2486_v25 = vpack.c.bf16 %v702_v22, %v701_v20  ;;  %v2488_v26 = vpack.c.bf16 %v614_v24, %v613_v23  ;;  %v719_v27 = vld [vmem:[%s2968_s10 + $0xa0] sm:$0xff]  ;;  %v720_v28 = vld [vmem:[%s2968_s10 + $0xa8] sm:$0xff]  ;;  %v615_v35 = vld [vmem:[%s2967_s9 + $0xb0] sm:$0xff]  ;;  %vm821_vm11 = vcmask 31744   ;;  %s2288_s25 = smov 104   ;;  %s2289_s30 = smov 120  }
  0x22   : > { %1967 = vmatprep.subr.bf16.mxu1 %v2461_v17  ;;  %v597_v29 = vld [vmem:[%s2967_s9 + $0x20] sm:$0xff]  ;;  %v2499_v30 = vpack.c.bf16 %v720_v28, %v719_v27  ;;  %v598_v31 = vld [vmem:[%s2967_s9 + $0x28] sm:$0xff]  ;;  %v616_v36 = vld [vmem:[%s2967_s9 + $0xb8] sm:$0xff]  ;;  %vm1181_vm12 = vcmask 130048   ;;  %s1549_s18 = sshll.u32 %s2735_s29, 4  ;;  %s1531_s28 = scalar_lea.sflag [#allocation3], %s2729_s17  ;;  %s1550_s18 = int_to_ptr.vmem [resolvable:$true] %s1549_s18 }
  0x23   : > { %v703_v32 = vld [vmem:[%s2968_s10 + $0x20] sm:$0xff]  ;;  %v704_v33 = vld [vmem:[%s2968_s10 + $0x28] sm:$0xff]  ;;  %v2511_v34 = vpack.c.bf16 %v598_v31, %v597_v29  ;;  %v721_v37 = vld [vmem:[%s2968_s10 + $0xb0] sm:$0xff]  ;;  %v2527_v39 = vpack.c.bf16 %v616_v36, %v615_v35  ;;  %s2171_s23 = scalar_lea.vmem %s1550_s18, 64  ;;  %s2290_s15 = smov [#allocation2]  }
  0x24   : > { %1937 = vmatpush3.bf16.msra.mxu0 %v2473_v21  ;;  %v2525_v38 = vpack.c.bf16 %v704_v33, %v703_v32  ;;  %v722_v40 = vld [vmem:[%s2968_s10 + $0xb8] sm:$0xff]  ;;  %v599_v41 = vld [vmem:[%s2967_s9 + $0x30] sm:$0xff]  ;;  %v617_v46 = vld [vmem:[%s2967_s9 + $0xc0] sm:$0xff]  ;;  %p2172_p12 = scmp.ne.s32.totalorder %s1550_s18, %s2171_s23  ;;  %s2175_s14 = sshll.u32 %s2290_s15, 4  ;;  %s2176_s14 = int_to_ptr.vmem [resolvable:$false] %s2175_s14 }
  0x25   : > { %1969 = vmatpush3.bf16.msra.mxu1 %v2486_v25  ;;  %1939 = vmatprep.subr.bf16.mxu0 %v2488_v26  ;;  %v600_v42 = vld [vmem:[%s2967_s9 + $0x38] sm:$0xff]  ;;  %v2539_v43 = vpack.c.bf16 %v722_v40, %v721_v37  ;;  %v705_v44 = vld [vmem:[%s2968_s10 + $0x30] sm:$0xff]  ;;  %v618_v47 = vld [vmem:[%s2967_s9 + $0xc8] sm:$0xff]  ;;  %s2177_s16 = scalar_lea.vmem %s2176_s14, 128  ;;  %p2178_p1 = scmp.lt.s32.totalorder %s1550_s18, %s2176_s14 }
  0x26   : > { %1971 = vmatprep.subr.bf16.mxu1 %v2499_v30  ;;  %v706_v45 = vld [vmem:[%s2968_s10 + $0x38] sm:$0xff]  ;;  %v723_v48 = vld [vmem:[%s2968_s10 + $0xc0] sm:$0xff]  ;;  %v724_v49 = vld [vmem:[%s2968_s10 + $0xc8] sm:$0xff]  ;;  %v2560_v50 = vpack.c.bf16 %v600_v42, %v599_v41  ;;  %v2580_v55 = vpack.c.bf16 %v618_v47, %v617_v46  ;;  %p2173_p13 = pnand %p2172_p12, %p2397_p4  ;;  %p2179_p2 = scmp.lt.s32.totalorder %s2177_s16, %s2171_s23 }
  0x27   : > { %v601_v51 = vld [vmem:[%s2967_s9 + $0x40] sm:$0xff]  ;;  %v602_v52 = vld [vmem:[%s2967_s9 + $0x48] sm:$0xff]  ;;  %v2578_v54 = vpack.c.bf16 %v706_v45, %v705_v44  ;;  %v619_v57 = vld [vmem:[%s2967_s9 + $0xd0] sm:$0xff]  ;;  %v2592_v59 = vpack.c.bf16 %v724_v49, %v723_v48 }
  0x28   : > { %1941 = vmatpush3.bf16.msra.mxu0 %v2511_v34  ;;  %v707_v53 = vld [vmem:[%s2968_s10 + $0x40] sm:$0xff]  ;;  %v708_v56 = vld [vmem:[%s2968_s10 + $0x48] sm:$0xff]  ;;  %v620_v58 = vld [vmem:[%s2967_s9 + $0xd8] sm:$0xff]  ;;  %v2613_v2 = vpack.c.bf16 %v602_v52, %v601_v51  ;;  %p2174_p0 = pneg %p2173_p13  ;;  %p2180_p3 = por %p2179_p2, %p2178_p1 }
  0x29   : > { %1973 = vmatpush3.bf16.msra.mxu1 %v2525_v38  ;;  %1943 = vmatprep.subr.bf16.mxu0 %v2527_v39  ;;  %v725_v60 = vld [vmem:[%s2968_s10 + $0xd0] sm:$0xff]  ;;  %v726_v61 = vld [vmem:[%s2968_s10 + $0xd8] sm:$0xff]  ;;  %v621_v4 = vld [vmem:[%s2967_s9 + $0xe0] sm:$0xff]  ;;  %v2627_v9 = vpack.c.bf16 %v708_v56, %v707_v53  ;;  %v2629_v10 = vpack.c.bf16 %v620_v58, %v619_v57 }
  0x2a   : > { %1975 = vmatprep.subr.bf16.mxu1 %v2539_v43  ;;  %v603_v62 = vld [vmem:[%s2967_s9 + $0x50] sm:$0xff]  ;;  %v604_v63 = vld [vmem:[%s2967_s9 + $0x58] sm:$0xff]  ;;  %v622_v5 = vld [vmem:[%s2967_s9 + $0xe8] sm:$0xff]  ;;  %v2641_v15 = vpack.c.bf16 %v726_v61, %v725_v60  ;;  %p2181_p5 = pnand %p2180_p3, %p2174_p0 }
  0x2b   : > { %v709_v0 = vld [vmem:[%s2968_s10 + $0x50] sm:$0xff]  ;;  %v710_v1 = vld [vmem:[%s2968_s10 + $0x58] sm:$0xff]  ;;  %v727_v6 = vld [vmem:[%s2968_s10 + $0xe0] sm:$0xff]  ;;  %v2652_v22 = vpack.c.bf16 %v604_v63, %v603_v62  ;;  %v2669_v29 = vpack.c.bf16 %v622_v5, %v621_v4 }
  0x2c   : > { %1945 = vmatpush3.bf16.msra.mxu0 %v2560_v50  ;;  %v728_v11 = vld [vmem:[%s2968_s10 + $0xe8] sm:$0xff]  ;;  %v605_v13 = vld [vmem:[%s2967_s9 + $0x60] sm:$0xff]  ;;  %v623_v20 = vld [vmem:[%s2967_s9 + $0xf0] sm:$0xff]  ;;  %v2654_v23 = vpack.c.bf16 %v710_v1, %v709_v0 }
  0x2d   : > { %1977 = vmatpush3.bf16.msra.mxu1 %v2578_v54  ;;  %1947 = vmatprep.subr.bf16.mxu0 %v2580_v55  ;;  %v606_v14 = vld [vmem:[%s2967_s9 + $0x68] sm:$0xff]  ;;  %v711_v18 = vld [vmem:[%s2968_s10 + $0x60] sm:$0xff]  ;;  %v624_v24 = vld [vmem:[%s2967_s9 + $0xf8] sm:$0xff]  ;;  %v2671_v31 = vpack.c.bf16 %v728_v11, %v727_v6 }
  0x2e   : > { %1979 = vmatprep.subr.bf16.mxu1 %v2592_v59  ;;  %v712_v19 = vld [vmem:[%s2968_s10 + $0x68] sm:$0xff]  ;;  %v729_v27 = vld [vmem:[%s2968_s10 + $0xf0] sm:$0xff]  ;;  %v730_v28 = vld [vmem:[%s2968_s10 + $0xf8] sm:$0xff]  ;;  %v2673_v32 = vpack.c.bf16 %v606_v14, %v605_v13  ;;  %v2688_v40 = vpack.c.bf16 %v624_v24, %v623_v20 }
  0x2f   : > { %v2675_v33 = vpack.c.bf16 %v712_v19, %v711_v18  ;;  %v607_v35 = vld [vmem:[%s2967_s9 + $0x70] sm:$0xff]  ;;  %v608_v36 = vld [vmem:[%s2967_s9 + $0x78] sm:$0xff]  ;;  %v2690_v41 = vpack.c.bf16 %v730_v28, %v729_v27  ;;  %v455_v45 = vld [vmem:[%s452_s20] sm:$0xff] }
  0x30   : > { %1949 = vmatpush3.bf16.msra.mxu0 %v2613_v2  ;;  %v713_v37 = vld [vmem:[%s2968_s10 + $0x70] sm:$0xff]  ;;  %2983 = vst [vmem:[#allocation13_spill] sm:$0xff] %v2688_v40  ;;  %v2692_v42 = vpack.c.bf16 %v608_v36, %v607_v35  ;;  %v714_v44 = vld [vmem:[%s2968_s10 + $0x78] sm:$0xff]  ;;  %v456_v46 = vld [vmem:[%s452_s20 + $0x8] sm:$0xff]  ;;  %v507_v52 = vrot.slane %v455_v45, 4 }
  0x31   : > { %1981 = vmatpush3.bf16.msra.mxu1 %v2627_v9  ;;  %1951 = vmatprep.subr.bf16.mxu0 %v2629_v10  ;;  %v2698_v47 = vpack.c.bf16 %v714_v44, %v713_v37  ;;  %v457_v48 = vld [vmem:[%s452_s20 + $0x10] sm:$0xff]  ;;  %v458_v49 = vld [vmem:[%s452_s20 + $0x18] sm:$0xff]  ;;  %v2700_v51 = vld [vmem:[%s452_s20 + $0x20] sm:$0xff]  ;;  %v513_v53 = vrot.slane %v456_v46, 4  ;;  %v463_v56 = vadd.f32 %v456_v46, %v455_v45 }
  0x32   : > { %1983 = vmatprep.subr.bf16.mxu1 %v2641_v15  ;;  %v460_v57 = vld [vmem:[%s452_s20 + $0x28] sm:$0xff]  ;;  %v2702_v58 = vld [vmem:[%s452_s20 + $0x30] sm:$0xff]  ;;  %v2704_v60 = vld [vmem:[%s452_s20 + $0x38] sm:$0xff]  ;;  %v519_v61 = vrot.slane %v457_v48, 4  ;;  %v525_v62 = vrot.slane %v458_v49, 4  ;;  %v531_v63 = vrot.slane %v2700_v51, 4  ;;  %v466_v0 = vadd.f32 %v458_v49, %v457_v48 }
  0x33   : > { %v508_v1 = vadd.f32 %v507_v52, %v455_v45  ;;  %v514_v4 = vadd.f32 %v513_v53, %v456_v46  ;;  %v537_v5 = vrot.slane %v460_v57, 4  ;;  %v543_v6 = vrot.slane %v2702_v58, 4  ;;  %464 = vadd.xlane.f32.xlu0 %v463_v56  ;;  %s2287_s20 = smov 8   ;;  %vm2774_vm13 = vmpackc.low %vm1181_vm12, %vm1181_vm12 }
  0x34   : > { %1953 = vmatpush3.bf16.msra.mxu0 %v2652_v22  ;;  %v520_v11 = vadd.f32 %v519_v61, %v457_v48  ;;  %v526_v13 = vadd.f32 %v525_v62, %v458_v49  ;;  %v532_v14 = vadd.f32 %v531_v63, %v2700_v51  ;;  %v549_v18 = vrot.slane %v2704_v60, 4 }
  0x35   : > { %1985 = vmatpush3.bf16.msra.mxu1 %v2654_v23  ;;  %1955 = vmatprep.subr.bf16.mxu0 %v2669_v29  ;;  %v509_v19 = vrot.slane %v508_v1, 2  ;;  %v515_v20 = vrot.slane %v514_v4, 2  ;;  %v538_v24 = vadd.f32 %v537_v5, %v460_v57  ;;  %v544_v27 = vadd.f32 %v543_v6, %v2702_v58 }
  0x36   : > { %1987 = vmatprep.subr.bf16.mxu1 %v2671_v31  ;;  %v521_v28 = vrot.slane %v520_v11, 2  ;;  %v527_v35 = vrot.slane %v526_v13, 2  ;;  %v533_v36 = vrot.slane %v532_v14, 2  ;;  %v550_v37 = vadd.f32 %v549_v18, %v2704_v60 }
  0x37   : > { %v510_v44 = vadd.f32 %v509_v19, %v508_v1  ;;  %v516_v45 = vadd.f32 %v515_v20, %v514_v4  ;;  %v539_v46 = vrot.slane %v538_v24, 2  ;;  %v545_v48 = vrot.slane %v544_v27, 2  ;;  %467 = vadd.xlane.f32.xlu0 %v466_v0 }
  0x38   : > { %1957 = vmatpush3.bf16.msra.mxu0 %v2673_v32  ;;  %v522_v49 = vadd.f32 %v521_v28, %v520_v11  ;;  %v528_v52 = vadd.f32 %v527_v35, %v526_v13  ;;  %v534_v53 = vadd.f32 %v533_v36, %v532_v14  ;;  %v551_v56 = vrot.slane %v550_v37, 2 }
  0x39   : > { %1989 = vmatpush3.bf16.msra.mxu1 %v2675_v33  ;;  %1959 = vmatprep.subr.bf16.mxu0 %v2688_v40  ;;  %v511_v61 = vrot.slane %v510_v44, 1  ;;  %v517_v62 = vrot.slane %v516_v45, 1  ;;  %v540_v63 = vadd.f32 %v539_v46, %v538_v24  ;;  %v546_v5 = vadd.f32 %v545_v48, %v544_v27 }
  0x3a   : > { %1991 = vmatprep.subr.bf16.mxu1 %v2690_v41  ;;  %v523_v6 = vrot.slane %v522_v49, 1  ;;  %v529_v1 = vrot.slane %v528_v52, 1  ;;  %v535_v4 = vrot.slane %v534_v53, 1  ;;  %v552_v18 = vadd.f32 %v551_v56, %v550_v37 }
  0x3b   : > { %v512_v0 = vadd.f32 %v511_v61, %v510_v44  ;;  %v518_v19 = vadd.f32 %v517_v62, %v516_v45  ;;  %v541_v20 = vrot.slane %v540_v63, 1  ;;  %v547_v40 = vrot.slane %v546_v5, 1 }
  0x3c   : > { %1961 = vmatpush3.bf16.msra.mxu0 %v2692_v42  ;;  %v524_v11 = vadd.f32 %v523_v6, %v522_v49  ;;  %v530_v13 = vadd.f32 %v529_v1, %v528_v52  ;;  %v536_v14 = vadd.f32 %v535_v4, %v534_v53  ;;  %v553_v28 = vrot.slane %v552_v18, 1 }
  0x3d   : > { %1993 = vmatpush3.bf16.msra.mxu1 %v2698_v47  ;;  %v542_v35 = vadd.f32 %v541_v20, %v540_v63  ;;  %v548_v36 = vadd.f32 %v547_v40, %v546_v5  ;;  %v469_v24 = vadd.f32 %v460_v57, %v2700_v51  ;;  %v563_v46 = vcombine.low %v512_v0, %v518_v19 }
  0x3e   : > { %v554_v27 = vadd.f32 %v553_v28, %v552_v18  ;;  %v564_v48 = vcombine.low %v524_v11, %v530_v13  ;;  %v472_v44 = vadd.f32 %v2704_v60, %v2702_v58  ;;  %v479_v62 = vlaneseq }
  0x3f   : > { %v565_v37 = vcombine.low %v536_v14, %v542_v35  ;;  %470 = vadd.xlane.f32.xlu1 %v469_v24  ;;  %v2285_v24 = vmov 0  }
  0x40   : > { %v566_v45 = vcombine.low %v548_v36, %v554_v27  ;;  %v567_v56 = vrot.slane %v564_v48, 7  ;;  %v480_v5 = vand.u32 127, %v479_v62  ;;  %v482_v6 = vshrl.u32 %v479_v62, 7  ;;  %2157 = vset.pattern.permute.xlu1 %v2285_v24  ;;  %2158 = vset.pattern.permute.xlu0 %v2285_v24 }
  0x41   : > { %v571_v49 = vrot.slane %v565_v37, 6  ;;  %v2283_v36 = vmov 0.0  }
  0x42   : > { %v568_v52 = vsel %vm497_vm0, %v567_v56, %v563_v46  ;;  %v575_v40 = vrot.slane %v566_v45, 5  ;;  %v483_v1 = vsub.s32 %v480_v5, %v482_v6  ;;  %1910 = vmatprep.subr.mxu0 %v2283_v36  ;;  %1915 = vmatprep.subr.mxu1 %v2283_v36 }
  0x43   : > { %v570_v51 = vsel %vm569_vm1, %v567_v56, %v568_v52  ;;  %473 = vadd.xlane.f32.xlu1 %v472_v44  ;;  %v815_v52 = vld [vmem:[%s2960_s2] sm:$0xff] }
  0x44   : > { %v572_v57 = vsel %vm499_vm2, %v571_v49, %v570_v51 }
  0x45   : > { %v574_v53 = vsel %vm573_vm3, %v571_v49, %v572_v57 }
  0x46   : > { %v576_v61 = vsel %vm501_vm4, %v575_v40, %v574_v53 }
  0x47   : > { %v578_v58 = vsel %vm577_vm5, %v575_v40, %v576_v61 }
  0x48   : > { %v626_v60 = vcombine.high %v578_v58, %v578_v58 }
  0x4a   : > { %692 = vmatprep.mubr.f32.mxu0 %v626_v60  ;;  %795 = vmatprep.mubr.f32.mxu1 %v626_v60 }
  0x4b   : > { %693 = vmatmul.mubr.f32.vlgmr.msra.gmra.mrb[0].mxu0 %v578_v58  ;;  %796 = vmatmul.mubr.f32.vlgmr.msra.gmra.mrb[0].mxu1 %v578_v58  ;;  %v814_v58 = vld [vmem:[%s2959_s1] sm:$0xff] }
  0x4c   : > { %1912 = vmatprep.mubr.msk.f32.mxu0 %vm2284_vm7, %v2283_v36  ;;  %1917 = vmatprep.mubr.msk.f32.mxu1 %vm2284_vm7, %v2283_v36 }
  0xc0   : > { %v465_v63 = vpop.xlane.xlu0 %464 }
  0xc1   : > { %v484_v18 = vrot.slane %v465_v63, %v483_v1 }
  0xc4   : > { %v468_v4 = vpop.xlane.xlu0 %467 }
  0xc5   : > { %v488_v0 = vrot.slane %v468_v4, %v483_v1 }
  0xc7   : > { %v498_v11 = vsel %vm497_vm0, %v488_v0, %v484_v18 }
  0xcc   : > { %v471_v19 = vpop.xlane.xlu1 %470 }
  0xcd   : > { %v492_v20 = vrot.slane %v471_v19, %v483_v1 }
  0xcf   : > { %v500_v14 = vsel %vm499_vm2, %v492_v20, %v498_v11  ;;  %v904_v20 = vld [vmem:[%s2961_s3] sm:$0xf] }
  0xd0   : > { %v474_v13 = vpop.xlane.xlu1 %473  ;;  %v995_v11 = vld [vmem:[%s2964_s6] sm:$0xf] }
  0xd1   : > { %v496_v28 = vrot.slane %v474_v13, %v483_v1  ;;  %v905_v13 = vld [vmem:[%s2962_s4] sm:$0xf] }
  0xd3   : > { %v502_v35 = vsel %vm501_vm4, %v496_v28, %v500_v14  ;;  %v1089_v14 = vld [vmem:[%s2966_s8] sm:$0xf] }
  0xd4   : > { %506 = vst.msk [vmem:[%s2735_s29] sm:$0xf] %vm505_vm6, %v502_v35  ;;  %v994_v28 = vld [vmem:[%s2963_s5] sm:$0xf] }
  0xd5   : > { %v1088_v35 = vld [vmem:[%s2965_s7] sm:$0xf] }
  0xdb   : > { %v591_v40 = vld [vmem:[%s2735_s29] sm:$0xf] }
  0xdc   : > { %v592_v51 = vmul.f32 0.00390625, %v591_v40 }
 0x11e   : > { %v1796_v27 = vpop.f32.mrb[0].mxu0  ;;  %v1831_v46 = vpop.f32.mrb[0].mxu1 }
 0x11f   : > { %v1797_v48 = vpop.f32.mrb[1].mxu0  ;;  %v1832_v37 = vpop.f32.mrb[1].mxu1 }
 0x120   : > { %v1798_v44 = vadd.f32 %v1797_v48, %v1796_v27  ;;  %v1833_v45 = vadd.f32 %v1832_v37, %v1831_v46 }
 0x122   : > { %v698_v56 = vmul.f32 0.0078125, %v1798_v44  ;;  %v801_v49 = vmul.f32 0.0078125, %v1833_v45 }
 0x124   : > { %807 = vrot.lane.b32.xlu1 %v801_v49, %s2286_s19  ;;  %803 = vrot.lane.b32.xlu0 %v698_v56, %s2287_s20 }
 0x128   : > { %818 = vperm.xlu1 %2157, %v815_v52  }
 0x196   : > { %v808_v57 = vpop.permute.xlu1 %807  ;;  %v804_v53 = vpop.permute.xlu0 %803 }
 0x197   : > { %v811_v61 = vsel %vm810_vm8, %v592_v51, %v804_v53 }
 0x198   : > { %v813_v60 = vsel %vm812_vm9, %v811_v61, %v808_v57 }
 0x199   : > { %1911 = vmatpush3.msk.msra.mxu0 %vm825_vm10, %v813_v60 }
 0x19a   : > { %1913 = vmatmul.mubr.msk.f32.vlgmr.msra.gmra.mrb[2].mxu0 %vm821_vm11, %v814_v58  ;;  %1920 = vmatprep.subr.mxu0 %v2283_v36 }
 0x19b   : > { %1922 = vmatprep.mubr.msk.f32.mxu0 %vm2284_vm7, %v2283_v36 }
 0x1a7   : > { %v819_v62 = vpop.permute.xlu1 %818 }
 0x26d   : > { %v895_v63 = vpop.f32.mrb[2].mxu0 }
 0x26e   : > { %v896_v5 = vadd.f32 %v895_v63, %v819_v62  ;;  %v1914_v6 = vpop.f32.mrb[3].mxu0 }
 0x270   : > { %v899_v1 = vadd.f32 3.0, %v896_v5 }
 0x272   : > { %v900_v4 = vmax.f32 %v899_v1, 0.0 }
 0x274   : > { %v901_v18 = vmin.f32 %v900_v4, 6.0 }
 0x276   : > { %v902_v0 = vmul.f32 %v901_v18, %v896_v5 }
 0x278   : > { %v903_v19 = vmul.f32 0.16666667, %v902_v0 }
 0x27a   : > { %1095 = vrot.lane.b32.xlu0 %v903_v19, %s2288_s25  ;;  %1002 = vrot.lane.b32.xlu1 %v903_v19, %s2289_s30  ;;  %s1757_s30 = sshll.u32 %s2273_s24, 6 }
 0x27b   : > { %1916 = vmatpush3.msra.mxu1 %v903_v19  ;;  %s2885_s27 = scalar_lea.hbm %s2969_s11, %s1757_s30 }
 0x27c   : > { %1918 = vmatmul.mubr.msk.f32.vlgmr.msra.gmra.mrb[2].mxu1 %vm810_vm8, %v904_v20  ;;  %1925 = vmatprep.subr.mxu1 %v2283_v36 }
 0x27d   : > { %1927 = vmatprep.mubr.msk.f32.mxu1 %vm2284_vm7, %v2283_v36 }
 0x27e   : > { %998 = vperm.xlu1 %2157, %v995_v11   ;;  %1092 = vperm.xlu0 %2158, %v1089_v14  }
 0x282   : > { %908 = vperm.xlu1 %2157, %v905_v13  }
 0x2ec   : > { %v1096_v36 = vpop.permute.xlu0 %1095  ;;  %v1003_v24 = vpop.permute.xlu1 %1002 }
 0x2ed   : > { %1921 = vmatpush3.msra.mxu0 %v1003_v24  ;;  %1926 = vmatpush3.msra.mxu1 %v1096_v36 }
 0x2ee   : > { %1923 = vmatmul.mubr.msk.f32.vlgmr.msra.gmra.mrb[4].mxu0 %vm810_vm8, %v994_v28  ;;  %1928 = vmatmul.mubr.msk.f32.vlgmr.msra.gmra.mrb[4].mxu1 %vm810_vm8, %v1088_v35 }
 0x2ef   : > { %1996 = vmatprep.subr.msk.bf16.mxu0 %vm2774_vm13, %v2421_v3  ;;  %2044 = vmatprep.subr.msk.bf16.mxu1 %vm2774_vm13, %v2432_v7  ;;  %v2986_v3 = vld [vmem:[#allocation13_spill] sm:$0xff] }
 0x2f4   : > { %1999 = vmatpush3.bf16.xpose.msk.msra.mxu0 %vm2774_vm13, %v2434_v8  ;;  %2047 = vmatpush3.bf16.xpose.msk.msra.mxu1 %vm2774_vm13, %v2446_v12 }
 0x2f5   : > { %2002 = vmatprep.subr.msk.bf16.mxu0 %vm2774_vm13, %v2459_v16  ;;  %2050 = vmatprep.subr.msk.bf16.mxu1 %vm2774_vm13, %v2461_v17 }
 0x2fc   : > { %2005 = vmatpush3.bf16.xpose.msk.msra.mxu0 %vm2774_vm13, %v2473_v21  ;;  %2053 = vmatpush3.bf16.xpose.msk.msra.mxu1 %vm2774_vm13, %v2486_v25 }
 0x2fd   : > { %2008 = vmatprep.subr.msk.bf16.mxu0 %vm2774_vm13, %v2488_v26  ;;  %2056 = vmatprep.subr.msk.bf16.mxu1 %vm2774_vm13, %v2499_v30  ;;  %v999_v7 = vpop.permute.xlu1 %998 }
 0x301   : > { %v909_v8 = vpop.permute.xlu1 %908 }
 0x304   : > { %2011 = vmatpush3.bf16.xpose.msk.msra.mxu0 %vm2774_vm13, %v2511_v34  ;;  %2059 = vmatpush3.bf16.xpose.msk.msra.mxu1 %vm2774_vm13, %v2525_v38 }
 0x305   : > { %2014 = vmatprep.subr.msk.bf16.mxu0 %vm2774_vm13, %v2527_v39  ;;  %2062 = vmatprep.subr.msk.bf16.mxu1 %vm2774_vm13, %v2539_v43 }
 0x30c   : > { %2017 = vmatpush3.bf16.xpose.msk.msra.mxu0 %vm2774_vm13, %v2560_v50  ;;  %2065 = vmatpush3.bf16.xpose.msk.msra.mxu1 %vm2774_vm13, %v2578_v54  ;;  %v1093_v50 = vpop.permute.xlu0 %1092 }
 0x30d   : > { %2020 = vmatprep.subr.msk.bf16.mxu0 %vm2774_vm13, %v2580_v55  ;;  %2068 = vmatprep.subr.msk.bf16.mxu1 %vm2774_vm13, %v2592_v59 }
 0x314   : > { %2023 = vmatpush3.bf16.xpose.msk.msra.mxu0 %vm2774_vm13, %v2613_v2  ;;  %2071 = vmatpush3.bf16.xpose.msk.msra.mxu1 %vm2774_vm13, %v2627_v9 }
 0x315   : > { %2026 = vmatprep.subr.msk.bf16.mxu0 %vm2774_vm13, %v2629_v10  ;;  %2074 = vmatprep.subr.msk.bf16.mxu1 %vm2774_vm13, %v2641_v15 }
 0x31c   : > { %2029 = vmatpush3.bf16.xpose.msk.msra.mxu0 %vm2774_vm13, %v2652_v22  ;;  %2077 = vmatpush3.bf16.xpose.msk.msra.mxu1 %vm2774_vm13, %v2654_v23 }
 0x31d   : > { %2032 = vmatprep.subr.msk.bf16.mxu0 %vm2774_vm13, %v2669_v29  ;;  %2080 = vmatprep.subr.msk.bf16.mxu1 %vm2774_vm13, %v2671_v31 }
 0x324   : > { %2035 = vmatpush3.bf16.xpose.msk.msra.mxu0 %vm2774_vm13, %v2673_v32  ;;  %2083 = vmatpush3.bf16.xpose.msk.msra.mxu1 %vm2774_vm13, %v2675_v33 }
 0x325   : > { %2038 = vmatprep.subr.msk.bf16.mxu0 %vm2774_vm13, %v2986_v3  ;;  %2086 = vmatprep.subr.msk.bf16.mxu1 %vm2774_vm13, %v2690_v41 }
 0x32c   : > { %2041 = vmatpush3.bf16.xpose.msk.msra.mxu0 %vm2774_vm13, %v2692_v42  ;;  %2089 = vmatpush3.bf16.xpose.msk.msra.mxu1 %vm2774_vm13, %v2698_v47 }
 0x34f   : > { %v980_v12 = vpop.f32.mrb[2].mxu1 }
 0x350   : > { %v981_v16 = vadd.f32 %v980_v12, %v909_v8  ;;  %v1919_v17 = vpop.f32.mrb[3].mxu1 }
 0x352   : > { %v984_v21 = vand.u32 2147483647, %v981_v16  ;;  %vm988_vm14 = vcmp.ge.f32.partialorder %v981_v16, 0.0 }
 0x354   : > { %v985_v25 = vsub.f32 0.0, %v984_v21 }
 0x356   : > { %v986_v26 = vmul.f32 1.442695, %v985_v25 }
 0x358   : > { %2159 = vpow2.f32 %v986_v26 }
 0x362   : > { %v2160_v30 = vpop.eup %2159 }
 0x363   : > { %v989_v34 = vadd.f32 1.0, %v2160_v30 }
 0x365   : > { %2161 = vrcp.f32 %v989_v34 }
 0x36f   : > { %v2162_v38 = vpop.eup %2161 }
 0x370   : > { %v992_v39 = vmul.f32 %v2162_v38, %v2160_v30 }
 0x372   : > { %v993_v43 = vsel %vm988_vm14, %v2162_v38, %v992_v39 }
 0x373   : > { %1529 = vst.msk [vmem:[%s2735_s29] sm:$0xf] %vm505_vm6, %v993_v43 }
 0x3c1   : > { %v1074_v54 = vpop.f32.mrb[4].mxu0  ;;  %v1167_v55 = vpop.f32.mrb[4].mxu1 }
 0x3c2   : > { %v1075_v59 = vadd.f32 %v1074_v54, %v999_v7  ;;  %v1168_v2 = vadd.f32 %v1167_v55, %v1093_v50  ;;  %v1924_v9 = vpop.f32.mrb[5].mxu0  ;;  %v1929_v10 = vpop.f32.mrb[5].mxu1 }
 0x3c4   : > { %v1078_v15 = vand.u32 2147483647, %v1075_v59  ;;  %v1171_v22 = vand.u32 2147483647, %v1168_v2  ;;  %vm1082_vm15 = vcmp.ge.f32.partialorder %v1075_v59, 0.0  ;;  %vm1175_vm0 = vcmp.ge.f32.partialorder %v1168_v2, 0.0 }
 0x3c6   : > { %v1079_v23 = vsub.f32 0.0, %v1078_v15  ;;  %v1172_v29 = vsub.f32 0.0, %v1171_v22 }
 0x3c8   : > { %v1080_v31 = vmul.f32 1.442695, %v1079_v23  ;;  %v1173_v32 = vmul.f32 1.442695, %v1172_v29 }
 0x3ca   : > { %2163 = vpow2.f32 %v1080_v31 }
 0x3cb   : > { %2165 = vpow2.f32 %v1173_v32 }
 0x3d4   : > { %v2164_v33 = vpop.eup %2163 }
 0x3d5   : > { %v2166_v41 = vpop.eup %2165  ;;  %v1083_v42 = vadd.f32 1.0, %v2164_v33 }
 0x3d6   : > { %v1176_v47 = vadd.f32 1.0, %v2166_v41 }
 0x3d7   : > { %2167 = vrcp.f32 %v1083_v42 }
 0x3d8   : > { %2169 = vrcp.f32 %v1176_v47 }
 0x3e1   : > { %v2168_v46 = vpop.eup %2167 }
 0x3e2   : > { %v2170_v48 = vpop.eup %2169  ;;  %v1086_v37 = vmul.f32 %v2168_v46, %v2164_v33 }
 0x3e3   : > { %v1179_v44 = vmul.f32 %v2170_v48, %v2166_v41 }
 0x3e4   : > { %v1087_v45 = vsel %vm1082_vm15, %v2168_v46, %v1086_v37 }
 0x3e5   : > { %1874 = vmatprep.mubr.msk.f32.mxu0 %vm1181_vm12, %v1087_v45  ;;  %v1180_v56 = vsel %vm1175_vm0, %v2170_v48, %v1179_v44 }
 0x3e6   : > { %1908 = vmatprep.mubr.msk.f32.mxu1 %vm1181_vm12, %v1180_v56  ;;  %1875 = vmatmul.mubr.msk.f32.vlgmr.msra.gmra.mrb[6].mxu0 %vm1181_vm12, %v1087_v45 }
 0x3e7   : > { %1909 = vmatmul.mubr.msk.f32.vlgmr.msra.gmra.mrb[6].mxu1 %vm1181_vm12, %v1180_v56 }
 0x3e8   : > { %2184 = shalt.err (!%p2181_p5)
}
 0x3e9   : > { %s2185_s29 = scalar_lea.hbm %s2885_s27, 64  ;;  %s2189_s19 = scalar_lea.hbm %s2969_s11, 128 }
 0x3ea   : > { %p2186_p6 = scmp.ne.s32.totalorder %s2885_s27, %s2185_s29  ;;  %p2190_p10 = scmp.lt.u32.totalorder %s2885_s27, %s2969_s11 }
 0x3eb   : > { %p2191_p11 = scmp.lt.u32.totalorder %s2189_s19, %s2185_s29  ;;  %p2193_p13 = scmp.lt.u32.totalorder %s2185_s29, %s2885_s27 }
 0x3ec   : > { %p2187_p7 = pnand %p2186_p6, %p2397_p4 }
 0x3ed   : > { %p2192_p12 = por %p2191_p11, %p2190_p10 }
 0x3ee   : > { %p2188_p9 = pneg %p2187_p7 }
 0x3ef   : > { %p2194_p0 = por %p2193_p13, %p2192_p12 }
 0x3f1   : > { %p2195_p1 = pnand %p2194_p0, %p2188_p9 }
 0x3f3   : > { %2198 = shalt.err (!%p2195_p1)
}
 0x3f4   : > { %2090 = dma.vmem_to_hbm [thread:$0]  (%p2397_p4), %s1550_s18, 64, %s2885_s27, %s1531_s28  }
 0x3f5   : > { %s1681_s23 = sshll.u32 %s2729_s17, 3  ;;  %s1763_s14 = sshll.u32 %s2273_s24, 7 }
 0x3f6   : > { %s442_s16 = scalar_lea.vmem [#allocation4], %s1681_s23  ;;  %s2910_s19 = scalar_lea.hbm %s2970_s12, %s1763_s14 }
 0x3f7   : > { %s1563_s29 = sshll.u32 %s442_s16, 4  ;;  %s1536_s18 = scalar_lea.sflag [#allocation5], %s2729_s17  ;;  %s2912_s29 = int_to_ptr.vmem [resolvable:$true] %s1563_s29 }
 0x3f8   : > { %s2199_s27 = scalar_lea.vmem %s2912_s29, 128  ;;  %s2291_s24 = smov [#allocation4]  }
 0x3f9   : > { %p2200_p2 = scmp.ne.s32.totalorder %s2912_s29, %s2199_s27  ;;  %s2203_s28 = sshll.u32 %s2291_s24, 4  ;;  %s2204_s28 = int_to_ptr.vmem [resolvable:$false] %s2203_s28 }
 0x3fa   : > { %s2205_s20 = scalar_lea.vmem %s2204_s28, 256  ;;  %p2206_p6 = scmp.lt.s32.totalorder %s2912_s29, %s2204_s28 }
 0x3fb   : > { %p2201_p3 = pnand %p2200_p2, %p2397_p4  ;;  %p2207_p7 = scmp.lt.s32.totalorder %s2205_s20, %s2199_s27 }
 0x3fd   : > { %p2202_p5 = pneg %p2201_p3  ;;  %p2208_p9 = por %p2207_p7, %p2206_p6 }
 0x3ff   : > { %p2209_p10 = pnand %p2208_p9, %p2202_p5 }
 0x4b9   : > { %v1347_v49 = vpop.f32.mrb[6].mxu0 }
 0x4ba   : > { %v1517_v52 = vpop.f32.mrb[6].mxu1  ;;  %v1349_v40 = vpop.f32.mrb[7].mxu0 }
 0x4bb   : > { %v1522_v51 = vmul.f32 %v1517_v52, %v1347_v49  ;;  %v1519_v57 = vpop.f32.mrb[7].mxu1 }
 0x4bc   : > { %v1523_v53 = vmul.f32 %v1519_v57, %v1349_v40 }
 0x4be   : > { %v1526_v61 = vcombine.low %v1522_v51, %v1523_v53 }
 0x4c0   : > { %1528 = vst [vmem:[%s442_s16] sm:$0xff] %v1526_v61 }
 0x4c1   : > { %2212 = shalt.err (!%p2209_p10)
}
 0x4c2   : > { %s2213_s17 = scalar_lea.hbm %s2910_s19, 128  ;;  %s2217_s14 = scalar_lea.hbm %s2970_s12, 256 }
 0x4c3   : > { %p2214_p11 = scmp.ne.s32.totalorder %s2910_s19, %s2213_s17  ;;  %p2218_p0 = scmp.lt.u32.totalorder %s2910_s19, %s2970_s12 }
 0x4c4   : > { %p2219_p1 = scmp.lt.u32.totalorder %s2217_s14, %s2213_s17  ;;  %p2221_p3 = scmp.lt.u32.totalorder %s2213_s17, %s2910_s19 }
 0x4c5   : > { %p2215_p12 = pnand %p2214_p11, %p2397_p4 }
 0x4c6   : > { %p2220_p2 = por %p2219_p1, %p2218_p0 }
 0x4c7   : > { %p2216_p13 = pneg %p2215_p12 }
 0x4c8   : > { %p2222_p5 = por %p2221_p3, %p2220_p2 }
 0x4ca   : > { %p2223_p6 = pnand %p2222_p5, %p2216_p13 }
 0x4cc   : > { %2226 = shalt.err (!%p2223_p6)
}
 0x4cd   : > { %2091 = dma.vmem_to_hbm [thread:$0]  (%p2397_p4), %s2912_s29, 128, %s2910_s19, %s1536_s18  }
 0x4ce PF: > { %p2101_p7 = scmp.ge.s32.totalorder %s2281_s26, 2  ;;  %s1575_s27 = sand.u32 1, %s2261_s21  }
 0x4cf   : > { %s1576_s24 = scalar_lea.sflag [#allocation3], %s1575_s27 }
 0x4d0   : > { %p2095_p9 = pnand %p2101_p7, %p2404_p8 }
 0x4d2   : > { %2252 = dma.done.wait (!%p2095_p9), %s1576_s24, 64  }
 0x4d3   : > { %2254 = vsyncadd (!%p2095_p9), %s1576_s24, 4294967232  ;;  %s1585_s28 = scalar_lea.sflag [#allocation5], %s1575_s27 }
 0x4d4   : > { %2256 = dma.done.wait (!%p2095_p9), %s1585_s28, 128  }
 0x4d5   : > { %2258 = vsyncadd (!%p2095_p9), %s1585_s28, 4294967168  ;;  %s29_s26 = sadd.s32 1, %s2281_s26   ;;  %s2988_s13 = sld [smem:[#allocation8_spill]] }
 0x4d6   : > { %p26_p10 = scmp.ge.s32.totalorder %s29_s26, 4   ;;  %s2989_s23 = sld [smem:[#allocation12_spill]] }
 0x4d7   : > { %s2990_s24 = sld [smem:[#allocation9_spill]]  ;;  %s2991_s25 = sld [smem:[#allocation10_spill]] }
 0x4d8   : > { %s2992_s21 = smov %s2265_s22  ;;  %28 = sbr.rel (!%p26_p10) target bundleno = 6 (0x6), region = 122 }
 0x4db   : > { %s2993_s22 = smov %s2988_s13 }
 0x4df   :  { %1590 = vsyncpa [#allocation3], 1 }
 0x4e0   :  { %1592 = vsyncpa [#allocation3 + $0x1], 1 }
 0x4e1   :  { %1593 = vsyncpa [#allocation5], 1 }
 0x4e2   :  { %1595 = vsyncpa [#allocation5 + $0x1], 1 }

</bundles_post_ra>
